<compile_context>
chip_gen: v7x
topology: tpu7x:2x2x1
jax: 0.10.0
libtpu: 0.0.40
codegen_flags: <defaults>
</compile_context>

<pallas_src>
import jax
import jax.numpy as jnp
from jax import lax
from jax.experimental import pallas as pl
from jax.experimental.pallas import tpu as pltpu

FINAL_VECTOR_SIZE = 10
LANES = 128
TARGET_BLOCK_BYTES = 2 * 1024 * 1024  # per input per block (x2 inputs x2 bufs = 8 MiB)


def _round_up(x, m):
    return (x + m - 1) // m * m


def _make_kernel(last_valid, block_elems):
    """Builds the per-block SmoothL1 partial-sum kernel.

    `last_valid` / `block_elems` are Python ints (shape-derived), so the mask
    logic is only *emitted* when there is actually padding / an overrunning
    last block, and even then it only *executes* for the last grid step.
    """
    needs_mask = last_valid < block_elems

    def kernel(pred_ref, gt_ref, out_ref):
        p = pred_ref[...].astype(jnp.float32)
        g = gt_ref[...].astype(jnp.float32)
        d = p - g
        ad = jnp.abs(d)
        # Branch-free SmoothL1 (beta = 1):
        #   |d| < 1 : m = |d|  ->  |d|*(|d| - 0.5*|d|) = 0.5*d^2
        #   |d| >= 1: m = 1    ->  |d| - 0.5
        m = jnp.minimum(ad, 1.0)
        loss = m * (ad - 0.5 * m)

        if not needs_mask:
            # Fully covered block(s): no per-element index math at all.
            out_ref[...] = jnp.sum(loss, axis=0, keepdims=True)
        else:
            last = pl.num_programs(0) - 1
            i = pl.program_id(0)

            @pl.when(i != last)
            def _():
                out_ref[...] = jnp.sum(loss, axis=0, keepdims=True)

            @pl.when(i == last)
            def _():
                # Block-local indices (max < block_elems << 2^31, no overflow).
                row = lax.broadcasted_iota(jnp.int32, loss.shape, 0)
                col = lax.broadcasted_iota(jnp.int32, loss.shape, 1)
                local_idx = row * LANES + col
                # Kills both zero-padding and garbage rows of an overrunning
                # last block (select, so NaN/Inf garbage cannot propagate).
                masked = jnp.where(local_idx < last_valid, loss, 0.0)
                out_ref[...] = jnp.sum(masked, axis=0, keepdims=True)

    return kernel


def spanet_loss(pred_vector, gt_vector, final_vector_size=FINAL_VECTOR_SIZE):
    """SPANetLoss forward: mean SmoothL1 over view(-1, final_vector_size)."""
    pred = jnp.reshape(pred_vector, (-1, final_vector_size))
    gt = jnp.reshape(gt_vector, (-1, final_vector_size))
    assert pred.shape == gt.shape, "pred/gt must have the same element count"

    n = pred.size
    if n == 0:
        # PyTorch SmoothL1Loss with mean reduction over an empty tensor is NaN.
        return jnp.float32(float("nan"))

    # Flatten (free bitcast); kernel loads native dtype and upcasts in-register.
    p_flat = jnp.reshape(pred, (-1,))
    g_flat = jnp.reshape(gt, (-1,))

    if n % LANES == 0:
        # Zero-copy path: (rows, 128) is a pure bitcast view of the inputs.
        rows = n // LANES
    else:
        # TODO(synk): n % 128 != 0 still pays one pad copy per input; the only
        # zero-copy alternative for arbitrary n is rank-1 blocks / manual DMA,
        # which we avoid here for lowering robustness.
        padded_n = _round_up(n, 8 * LANES)
        p_flat = jnp.pad(p_flat, (0, padded_n - n))
        g_flat = jnp.pad(g_flat, (0, padded_n - n))
        rows = padded_n // LANES

    p2d = jnp.reshape(p_flat, (rows, LANES))
    g2d = jnp.reshape(g_flat, (rows, LANES))

    # Dtype-aware block sizing: ~2 MiB per input per block, rounded to the
    # packed-sublane granule of the dtype (f32: 8, bf16: 16, int8/fp8: 32).
    itemsize = max(jnp.dtype(pred.dtype).itemsize, jnp.dtype(gt.dtype).itemsize)
    granule = max(8, 32 // itemsize)
    target_rows = max(granule, TARGET_BLOCK_BYTES // (LANES * itemsize))
    target_rows = _round_up(target_rows, granule)

    if rows >= target_rows:
        block_rows = target_rows           # multiple of 8 (and 16 for bf16)
    else:
        block_rows = rows                  # whole-array block (== full dims, legal)

    num_blocks = pl.cdiv(rows, block_rows)
    block_elems = block_rows * LANES
    # Valid elements in the last grid block (relative to its start); static.
    last_valid = n - (num_blocks - 1) * block_elems

    partials = pl.pallas_call(
        _make_kernel(last_valid, block_elems),
        out_shape=jax.ShapeDtypeStruct((1, num_blocks * LANES), jnp.float32),
        grid=(num_blocks,),
        in_specs=[
            pl.BlockSpec((block_rows, LANES), lambda i: (i, 0)),
            pl.BlockSpec((block_rows, LANES), lambda i: (i, 0)),
        ],
        out_specs=pl.BlockSpec((1, LANES), lambda i: (0, i)),
        compiler_params=pltpu.CompilerParams(
            dimension_semantics=("parallel",)),
    )(p2d, g2d)

    # Tiny final cross-lane reduction + mean in plain XLA.
    return jnp.sum(partials) / jnp.float32(n)


def _reference(pred_vector, gt_vector, final_vector_size=FINAL_VECTOR_SIZE):
    p = jnp.reshape(pred_vector, (-1, final_vector_size)).astype(jnp.float32)
    g = jnp.reshape(gt_vector, (-1, final_vector_size)).astype(jnp.float32)
    d = p - g
    ad = jnp.abs(d)
    return jnp.mean(jnp.where(ad < 1.0, 0.5 * d * d, ad - 0.5))


if __name__ == "__main__":
    key = jax.random.PRNGKey(0)
    k1, k2, k3, k4 = jax.random.split(key, 4)

    # SPANetLoss has no learnable parameters; final_vector_size = 10.
    # Small shape viewable as (-1, 10): (batch=2, seq=4, 10). n=80 -> pad path.
    pred = jax.random.normal(k1, (2, 4, FINAL_VECTOR_SIZE), dtype=jnp.float32) * 2.0
    gt = jax.random.normal(k2, (2, 4, FINAL_VECTOR_SIZE), dtype=jnp.float32)

    loss = jax.block_until_ready(spanet_loss(pred, gt))
    ref = _reference(pred, gt)
    assert jnp.allclose(loss, ref, rtol=1e-5, atol=1e-6), (loss, ref)

    # bf16 inputs exercise native-dtype load + in-kernel f32 upcast.
    loss_bf16 = jax.block_until_ready(
        spanet_loss(pred.astype(jnp.bfloat16), gt.astype(jnp.bfloat16)))
    ref_bf16 = _reference(pred.astype(jnp.bfloat16), gt.astype(jnp.bfloat16))
    assert jnp.allclose(loss_bf16, ref_bf16, rtol=1e-5, atol=1e-6), (loss_bf16, ref_bf16)

    # (64, 10): n = 640 is a multiple of 128 -> zero-copy (5, 128) path,
    # whole-array block, no masking branch emitted at all.
    pred_a = jax.random.normal(k3, (64, FINAL_VECTOR_SIZE), dtype=jnp.float32) * 3.0
    gt_a = jax.random.normal(k4, (64, FINAL_VECTOR_SIZE), dtype=jnp.float32)
    loss_a = jax.block_until_ready(spanet_loss(pred_a, gt_a))
    ref_a = _reference(pred_a, gt_a)
    assert jnp.allclose(loss_a, ref_a, rtol=1e-5, atol=1e-6), (loss_a, ref_a)

    print("KERNEL_OK")
</pallas_src>

<mosaic_0001>
module attributes {stable_mosaic.version = 11 : i64} {
  func.func @kernel(%arg0: i32, %arg1: memref<8x128xf32, #tpu.memory_space<vmem>>, %arg2: memref<8x128xf32, #tpu.memory_space<vmem>>, %arg3: memref<1x128xf32, #tpu.memory_space<vmem>>) attributes {dimension_semantics = [#tpu.dimension_semantics<parallel>], iteration_bounds = array<i64: 1>, scalar_prefetch = 0 : i64, scratch_operands = 0 : i64, tpu.core_type = #tpu.core_type<tc>, window_params = [{transform_indices = @transform_0, window_bounds = array<i64: 8, 128>}, {transform_indices = @transform_1, window_bounds = array<i64: 8, 128>}, {transform_indices = @transform_2, window_bounds = array<i64: 1, 128>}]} {
    %c0 = arith.constant 0 : index
    %c0_0 = arith.constant 0 : index
    %0 = vector.load %arg1[%c0, %c0_0] : memref<8x128xf32, #tpu.memory_space<vmem>>, vector<8x128xf32>
    %c0_1 = arith.constant 0 : index
    %c0_2 = arith.constant 0 : index
    %1 = vector.load %arg2[%c0_1, %c0_2] : memref<8x128xf32, #tpu.memory_space<vmem>>, vector<8x128xf32>
    %2 = arith.subf %0, %1 : vector<8x128xf32>
    %3 = math.absf %2 : vector<8x128xf32>
    %cst = arith.constant 1.000000e+00 : f32
    %4 = vector.broadcast %cst : f32 to vector<8x128xf32>
    %5 = arith.minimumf %3, %4 : vector<8x128xf32>
    %cst_3 = arith.constant 5.000000e-01 : f32
    %6 = vector.broadcast %cst_3 : f32 to vector<8x128xf32>
    %7 = arith.mulf %6, %5 : vector<8x128xf32>
    %8 = arith.subf %3, %7 : vector<8x128xf32>
    %9 = arith.mulf %5, %8 : vector<8x128xf32>
    %c0_i32 = arith.constant 0 : i32
    %10 = arith.cmpi ne, %arg0, %c0_i32 : i32
    %11 = arith.extui %10 : i1 to i32
    %c0_i32_4 = arith.constant 0 : i32
    %12 = arith.cmpi ne, %11, %c0_i32_4 : i32
    scf.if %12 {
      %cst_7 = arith.constant dense<0.000000e+00> : vector<128xf32>
      %16 = vector.multi_reduction <add>, %9, %cst_7 [0] : vector<8x128xf32> to vector<128xf32>
      %17 = vector.shape_cast %16 : vector<128xf32> to vector<1x128xf32>
      %c0_8 = arith.constant 0 : index
      %c0_9 = arith.constant 0 : index
      %18 = vector.load %arg3[%c0_8, %c0_9] : memref<1x128xf32, #tpu.memory_space<vmem>>, vector<1x128xf32>
      tpu.vector_store %arg3[%c0_8, %c0_9], %17 {strides = array<i32>} : memref<1x128xf32, #tpu.memory_space<vmem>>, vector<1x128xf32>,
    } else {
    }
    %c0_i32_5 = arith.constant 0 : i32
    %13 = arith.cmpi eq, %arg0, %c0_i32_5 : i32
    %14 = arith.extui %13 : i1 to i32
    %c0_i32_6 = arith.constant 0 : i32
    %15 = arith.cmpi ne, %14, %c0_i32_6 : i32
    scf.if %15 {
      %16 = tpu.iota {dimensions = array<i32: 0>} : vector<8x128xi32>
      %17 = tpu.iota {dimensions = array<i32: 1>} : vector<8x128xi32>
      %c128_i32 = arith.constant 128 : i32
      %18 = vector.broadcast %c128_i32 : i32 to vector<8x128xi32>
      %19 = arith.muli %16, %18 : vector<8x128xi32>
      %20 = arith.addi %19, %17 : vector<8x128xi32>
      %c80_i32 = arith.constant 80 : i32
      %21 = vector.broadcast %c80_i32 : i32 to vector<8x128xi32>
      %22 = arith.cmpi slt, %20, %21 : vector<8x128xi32>
      %cst_7 = arith.constant 0.000000e+00 : f32
      %23 = vector.broadcast %cst_7 : f32 to vector<8x128xf32>
      %24 = arith.select %22, %9, %23 : vector<8x128xi1>, vector<8x128xf32>
      %cst_8 = arith.constant dense<0.000000e+00> : vector<128xf32>
      %25 = vector.multi_reduction <add>, %24, %cst_8 [0] : vector<8x128xf32> to vector<128xf32>
      %26 = vector.shape_cast %25 : vector<128xf32> to vector<1x128xf32>
      %c0_9 = arith.constant 0 : index
      %c0_10 = arith.constant 0 : index
      %27 = vector.load %arg3[%c0_9, %c0_10] : memref<1x128xf32, #tpu.memory_space<vmem>>, vector<1x128xf32>
      tpu.vector_store %arg3[%c0_9, %c0_10], %26 {strides = array<i32>} : memref<1x128xf32, #tpu.memory_space<vmem>>, vector<1x128xf32>,
    } else {
    }
    return
  }
  func.func @transform_0(%arg0: i32) -> (i32, i32) {
    %c0_i32 = arith.constant 0 : i32
    %c0_i32_0 = arith.constant 0 : i32
    return %arg0, %c0_i32 : i32, i32
  }
  func.func @transform_1(%arg0: i32) -> (i32, i32) {
    %c0_i32 = arith.constant 0 : i32
    %c0_i32_0 = arith.constant 0 : i32
    return %arg0, %c0_i32 : i32, i32
  }
  func.func @transform_2(%arg0: i32) -> (i32, i32) {
    %c0_i32 = arith.constant 0 : i32
    %c0_i32_0 = arith.constant 0 : i32
    return %c0_i32, %arg0 : i32, i32
  }
}

</mosaic_0001>

<bundles_post_ra>
// kernel: tpu_custom_call.1
= control target key start
LH: loop header
LB: loop body
LE: loop exit
PB: predicated region body
PF: predicated region fallthrough
CT: control target
= control target key end

     0   :  { %7 = vsyncpa [#allocation3], 0  ;;  %s219_s0 = inlined_call_operand.hbm [shape: f32[8,128], index: 0, kind: input, shape index: {}]   ;;  %s220_s1 = inlined_call_operand.hbm [shape: f32[8,128], index: 1, kind: input, shape index: {}]   ;;  %s221_s2 = inlined_call_operand.hbm [shape: f32[1,128], index: 2, kind: output, shape index: {}]  }
   0x1   :  { %8 = vsyncpa [#allocation6], 0 }
   0x2   :  { %9 = vsyncpa [#allocation4], 0  ;;  %s165_s9 = smov [#allocation2]   ;;  %s166_s11 = smov [#allocation5]  }
   0x3   :  { %s16_s10 = sshll.u32 %s165_s9, 4  ;;  %s26_s12 = sshll.u32 %s166_s11, 4  ;;  %s17_s10 = int_to_ptr.vmem [resolvable:$true] %s16_s10  ;;  %s27_s12 = int_to_ptr.vmem [resolvable:$true] %s26_s12 }
   0x4   :  { %s93_s15 = scalar_lea.hbm %s219_s0, 128 }
   0x5   :  { %p94_p0 = scmp.ne.s32.totalorder %s219_s0, %s93_s15  ;;  %p97_p1 = scmp.lt.u32.totalorder %s93_s15, %s219_s0 }
   0x7   :  { %p99_p2 = pnand %p97_p1, %p94_p0 }
   0x9   :  { %102 = shalt.err (!%p99_p2)
}
   0xa   :  { %s103_s20 = scalar_lea.vmem %s17_s10, 128  ;;  %p108_p4 = scmp.lt.s32.totalorder %s17_s10, %s17_s10 }
   0xb   :  { %p104_p3 = scmp.ne.s32.totalorder %s17_s10, %s103_s20  ;;  %p109_p5 = scmp.lt.s32.totalorder %s103_s20, %s103_s20 }
   0xd   :  { %p110_p6 = por %p109_p5, %p108_p4 }
   0xf   :  { %p111_p7 = pnand %p110_p6, %p104_p3 }
  0x11   :  { %114 = shalt.err (!%p111_p7)
}
  0x12   :  { %19 = dma.hbm_to_vmem [thread:$0]  %s219_s0, 128, %s17_s10, [#allocation3]  }
  0x13   :  { %s115_s25 = scalar_lea.hbm %s220_s1, 128 }
  0x14   :  { %p116_p8 = scmp.ne.s32.totalorder %s220_s1, %s115_s25  ;;  %p119_p9 = scmp.lt.u32.totalorder %s115_s25, %s220_s1 }
  0x16   :  { %p121_p10 = pnand %p119_p9, %p116_p8 }
  0x18   :  { %124 = shalt.err (!%p121_p10)
}
  0x19   :  { %s125_s30 = scalar_lea.vmem %s27_s12, 128  ;;  %p130_p12 = scmp.lt.s32.totalorder %s27_s12, %s27_s12 }
  0x1a   :  { %p126_p11 = scmp.ne.s32.totalorder %s27_s12, %s125_s30  ;;  %p131_p13 = scmp.lt.s32.totalorder %s125_s30, %s125_s30 }
  0x1c   :  { %p132_p0 = por %p131_p13, %p130_p12 }
  0x1e   :  { %p133_p1 = pnand %p132_p0, %p126_p11 }
  0x20   :  { %136 = shalt.err (!%p133_p1)
}
  0x21   :  { %29 = dma.hbm_to_vmem [thread:$0]  %s220_s1, 128, %s27_s12, [#allocation6]  }
  0x22   :  { %159 = dma.done.wait [#allocation3], 128  }
  0x23   :  { %160 = vsyncadd [#allocation3], 4294967168 }
  0x24   :  { %161 = dma.done.wait [#allocation6], 128  }
  0x25   :  { %162 = vsyncadd [#allocation6], 4294967168  ;;  %v59_v0 = vlaneseq  ;;  %v36_v2 = vld [vmem:[#allocation2] sm:$0xff]  ;;  %v37_v3 = vld [vmem:[#allocation5] sm:$0xff]  ;;  %s167_s1 = smov [#allocation7]  }
  0x26   :  { %v38_v4 = vsub.f32 %v36_v2, %v37_v3  ;;  %s80_s4 = sshll.u32 %s167_s1, 4  ;;  %s81_s4 = int_to_ptr.vmem [resolvable:$true] %s80_s4 }
  0x27   :  { %v60_v1 = vshrl.u32 %v59_v0, 7  ;;  %v62_v5 = vand.u32 127, %v59_v0  ;;  %s137_s5 = scalar_lea.vmem %s81_s4, 16  ;;  %s141_s6 = scalar_lea.vmem %s81_s4, 32 }
  0x28   :  { %v39_v7 = vand.u32 2147483647, %v38_v4  ;;  %p138_p2 = scmp.ne.s32.totalorder %s81_s4, %s137_s5  ;;  %p142_p3 = scmp.lt.s32.totalorder %s81_s4, %s81_s4 }
  0x29   :  { %v63_v6 = vmul.u32 128, %v60_v1  ;;  %p143_p4 = scmp.lt.s32.totalorder %s141_s6, %s137_s5 }
  0x2a   :  { %v40_v8 = vmin.f32 %v39_v7, 1.0 }
  0x2b   :  { %v64_v9 = vadd.s32 %v63_v6, %v62_v5  ;;  %p144_p5 = por %p143_p4, %p142_p3 }
  0x2c   :  { %v41_v10 = vmul.f32 0.5, %v40_v8 }
  0x2d   :  { %vm65_vm0 = vcmp.lt.s32.totalorder %v64_v9, 80  ;;  %p145_p6 = pnand %p144_p5, %p138_p2 }
  0x2e   :  { %v42_v11 = vsub.f32 %v39_v7, %v41_v10 }
  0x30   :  { %v43_v12 = vmul.f32 %v42_v11, %v40_v8 }
  0x32   :  { %v66_v13 = vsel %vm65_vm0, %v43_v12, 0.0 }
  0x33   :  { %v67_v14 = vrot.slane %v66_v13, 4 }
  0x35   :  { %v68_v15 = vadd.f32 %v67_v14, %v66_v13 }
  0x37   :  { %v69_v16 = vrot.slane %v68_v15, 2 }
  0x39   :  { %v70_v17 = vadd.f32 %v69_v16, %v68_v15 }
  0x3b   :  { %v71_v18 = vrot.slane %v70_v17, 1 }
  0x3d   :  { %v72_v19 = vadd.f32 %v71_v18, %v70_v17 }
  0x3f   :  { %73 = vst [vmem:[#allocation7] sm:$0x1] %v72_v19 }
  0x40   :  { %148 = shalt.err (!%p145_p6)
}
  0x41   :  { %s149_s9 = scalar_lea.hbm %s221_s2, 16 }
  0x42   :  { %p150_p7 = scmp.ne.s32.totalorder %s221_s2, %s149_s9  ;;  %p153_p8 = scmp.lt.u32.totalorder %s149_s9, %s221_s2 }
  0x44   :  { %p155_p9 = pnand %p153_p8, %p150_p7 }
  0x46   :  { %158 = shalt.err (!%p155_p9)
}
  0x47   :  { %83 = dma.vmem_to_hbm [thread:$0]  %s81_s4, 16, %s221_s2, [#allocation4]  }
  0x48   :  { %163 = dma.done.wait [#allocation4], 16  }
  0x49   :  { %164 = vsyncadd [#allocation4], 4294967280 }
  0x4a   :  { %87 = vsyncpa [#allocation3], 1 }
  0x4b   :  { %88 = vsyncpa [#allocation6], 1 }
  0x4c   :  { %89 = vsyncpa [#allocation4], 1 }

</bundles_post_ra>
